<compile_context>
chip_gen: v6e
topology: v6e:2x2x1
jax: 0.10.0
libtpu: 0.0.40
codegen_flags: <defaults>
</compile_context>

<pallas_src>
import math

import numpy as np
import jax
import jax.numpy as jnp
from jax import lax
from jax.experimental import pallas as pl
from jax.experimental.pallas import tpu as pltpu
from jax.scipy.special import erfc as _erfc_ref


# -----------------------------------------------------------------------------
# Deterministic parameters from the module's __init__ (radius=1, alpha=7).
# -----------------------------------------------------------------------------
RADIUS = 1
ALPHA = 7


def disk_patch(radius: int) -> np.ndarray:
    yy, xx = np.mgrid[-radius:radius + 1, -radius:radius + 1]
    mat = ((xx ** 2 + yy ** 2) <= radius ** 2).astype(np.float64)
    return mat / mat.sum()


def ring_patch(radius: int, alpha: int) -> np.ndarray:
    outer = alpha * radius
    yy, xx = np.mgrid[-outer:outer + 1, -outer:outer + 1]
    d2 = xx ** 2 + yy ** 2
    mat = ((d2 > radius ** 2) & (d2 <= outer ** 2)).astype(np.float64)
    return mat / mat.sum()


DISK = disk_patch(RADIUS)                 # (3, 3), sums to 1
RING = ring_patch(RADIUS, ALPHA)          # (15, 15), sums to 1
KSIZE = RING.shape[0]                     # 15
OUTER = ALPHA * RADIUS                    # 7
PAD = (KSIZE - 1) // 2                    # 7 == OUTER
COEFF = math.sqrt(math.pi) * math.sqrt(1.0 - 1.0 / (ALPHA * ALPHA)) * RADIUS
SQRT2 = math.sqrt(2.0)

# Combined kernel (for the pure-JAX reference conv): inner_conv - outer_conv.
COMB = -RING.copy()
_off = (KSIZE - DISK.shape[0]) // 2
COMB[_off:_off + DISK.shape[0], _off:_off + DISK.shape[0]] += DISK

# ---- two-weight / two-disk factoring ----------------------------------------
# COMB = w_disk*disk1 - w_ring*ring,  ring = disk(OUTER) \ disk(RADIUS)
DISK_COUNT = int(np.count_nonzero(DISK))            # 5
RING_COUNT = int(np.count_nonzero(RING))            # 144
W_DISK = 1.0 / DISK_COUNT
W_RING = 1.0 / RING_COUNT


def _halfwidths(r: int):
    """Per-row contiguous half-width of the circular disk of radius r."""
    return {dy: math.isqrt(r * r - dy * dy) for dy in range(-r, r + 1)}


_HW_OUT = _halfwidths(OUTER)
_HW_IN = _halfwidths(RADIUS)

# SCHEDULE[width] = ([outer-disk row offsets needing this centered width],
#                    [inner-disk row offsets needing it])
SCHEDULE = {}
for _dy, _hw in _HW_OUT.items():
    SCHEDULE.setdefault(2 * _hw + 1, ([], []))[0].append(_dy)
for _dy, _hw in _HW_IN.items():
    SCHEDULE.setdefault(2 * _hw + 1, ([], []))[1].append(_dy)


def _check_decomposition():
    yy, xx = np.mgrid[-OUTER:OUTER + 1, -OUTER:OUTER + 1]
    d2 = xx ** 2 + yy ** 2
    inner = (d2 <= RADIUS ** 2).astype(np.float64)
    outer = (d2 <= OUTER ** 2).astype(np.float64)
    rebuilt = (W_DISK + W_RING) * inner - W_RING * outer
    assert np.allclose(rebuilt, COMB), "two-weight factoring mismatch"
    assert int(inner.sum()) == DISK_COUNT
    assert int(outer.sum()) - DISK_COUNT == RING_COUNT


_check_decomposition()

# Abramowitz & Stegun 7.1.26: erf(x) for x >= 0, |abs err| < 1.5e-7.
_ERF_P = 0.3275911
_ERF_A1 = 0.254829592
_ERF_A2 = -0.284496736
_ERF_A3 = 1.421413741
_ERF_A4 = -1.453152027
_ERF_A5 = 1.061405429


# -----------------------------------------------------------------------------
# Block sizing (decoupled per pass; N padded instead of forcing nb | N).
# -----------------------------------------------------------------------------
def _pick_nb(n: int, cap: int) -> int:
    """Largest-ish nb <= cap minimizing the zero-padded batch size."""
    cap = max(1, min(cap, n))
    best_nb, best_pad = None, None
    for nb in range(max(1, cap // 2), cap + 1):
        npad = -(-n // nb) * nb
        if best_pad is None or npad < best_pad or (npad == best_pad and nb > best_nb):
            best_nb, best_pad = nb, npad
    return best_nb


def _pick_blocks(n: int, h: int, w: int):
    hp, wp = h + 2 * PAD, w + 2 * PAD
    # pass-2 per-image working set: double-buffered x,t + padded scratch +
    # running horizontal sum + 2 accumulators + erf temporaries (all f32).
    per_img_th = 4 * (4 * h * w + hp * wp + 2 * hp * w + 4 * h * w)
    cap_th = max(1, (10 << 20) // max(1, per_img_th))
    if n >= 2:
        cap_th = min(cap_th, (n + 1) // 2)     # >= 2 grid steps (v7x dual-TC)
    nb_th = _pick_nb(n, cap_th)
    n_pad = -(-n // nb_th) * nb_th
    g_th = n_pad // nb_th
    # pass 1 (stats) is HBM-bound: bigger blocks (~2 MiB/input), chosen as an
    # integer multiple of nb_th that divides g_th so one padded batch serves
    # both passes with no extra padding.
    per_img_st = 4 * 4 * h * w                  # x,t double-buffered
    f_cap = max(1, (8 << 20) // max(1, per_img_st * nb_th))
    f = 1
    for d in range(1, min(f_cap, g_th) + 1):
        if g_th % d == 0:
            f = d
    nb_st = nb_th * f
    g_st = g_th // f
    return nb_th, g_th, nb_st, g_st, n_pad


# -----------------------------------------------------------------------------
# Loss factory
# -----------------------------------------------------------------------------
def make_sacontrario_mse_loss(n: int, h: int, w: int):
    """Returns loss_fn(inputs, targets) for NCHW inputs of shape (n, 1, h, w)."""
    nb_th, g_th, nb_st, g_st, n_pad = _pick_blocks(n, h, w)
    n_el = n * h * w
    hp, wp = h + 2 * PAD, w + 2 * PAD

    # ---------------- pass 1: per-block sum(e), sum(e*e) ----------------
    def stats_kernel(x_ref, t_ref, se_ref, se2_ref):
        e = x_ref[...] - t_ref[...]                       # (nb_st, h, w) f32
        se_ref[...] = jnp.full((1, 8, 128), jnp.sum(e), dtype=jnp.float32)
        se2_ref[...] = jnp.full((1, 8, 128), jnp.sum(e * e), dtype=jnp.float32)

    # ---------------- pass 2: per-block sum(th_map - 0.5) ----------------
    def th_kernel(coef_ref, x_ref, t_ref, th_ref, ep_ref):
        # Zero-padded residual block.  Borders are rewritten to zero every
        # step (megacore-safe); one block-sized store, no concatenates.
        ep_ref[...] = jnp.zeros_like(ep_ref)
        ep_ref[:, PAD:PAD + h, PAD:PAD + w] = x_ref[...] - t_ref[...]
        ep = ep_ref[...]                                  # (nb_th, hp, wp)

        def rows(arr, dy):                                # -> (nb_th, h, w)
            return arr[:, PAD + dy:PAD + dy + h, :]

        # Incremental centered horizontal running sums (lane-dense width w)
        # plus one vertical add per kernel row: ~31 adds/pixel for the whole
        # 149-tap stencil.  Only ep, hk and the two accumulators stay live.
        hk = ep[:, :, PAD:PAD + w]                        # centered width 1
        s_out = None                                      # sum over disk(OUTER)
        s_in = None                                       # sum over disk(RADIUS)
        for half in range(OUTER + 1):
            if half > 0:                                  # grow width by 2
                hk = (hk + ep[:, :, PAD - half:PAD - half + w]
                         + ep[:, :, PAD + half:PAD + half + w])
            out_dys, in_dys = SCHEDULE.get(2 * half + 1, ((), ()))
            for dy in out_dys:
                r = rows(hk, dy)
                s_out = r if s_out is None else s_out + r
            for dy in in_dys:
                r = rows(hk, dy)
                s_in = r if s_in is None else s_in + r

        # y = coeff * diff / (sqrt2 * sigma) with
        # diff = (W_DISK + W_RING)*s_in - W_RING*s_out; both scalars are folded
        # into the SMEM coefficients on the host (sigma divide hoisted out).
        y = coef_ref[0] * s_in - coef_ref[1] * s_out

        # th_map - 0.5 == 0.5 * erf(|y|)^2.  A&S 7.1.26 erf; exp and approx
        # reciprocal on the EUP, one Newton step restores f32 accuracy.
        z = jnp.abs(y)
        d = 1.0 + _ERF_P * z
        r0 = pl.reciprocal(d, approx=True)
        u = r0 * (2.0 - d * r0)
        poly = u * (_ERF_A1 + u * (_ERF_A2 + u * (_ERF_A3 + u * (_ERF_A4 + u * _ERF_A5))))
        erf_z = 1.0 - poly * jnp.exp(-(z * z))
        th_half = 0.5 * (erf_z * erf_z)                   # th_map - 0.5
        th_ref[...] = jnp.full((1, 8, 128), jnp.sum(th_half), dtype=jnp.float32)

    partial = pl.BlockSpec((1, 8, 128), lambda i: (i, 0, 0))
    blk_st = pl.BlockSpec((nb_st, h, w), lambda i: (i, 0, 0))
    blk_th = pl.BlockSpec((nb_th, h, w), lambda i: (i, 0, 0))

    # Explicit VMEM budgets (v7x: 64 MiB physical / 32 MiB default scoped).
    st_need = 4 * nb_st * (4 * h * w) + 4 * 4 * 8 * 128
    th_need = 4 * nb_th * (4 * h * w + hp * wp + 2 * hp * w + 4 * h * w) + 4 * 2 * 8 * 128
    vmem_st = int(min(max(2 * st_need, 16 << 20), 30 << 20))
    vmem_th = int(min(max(2 * th_need, 16 << 20), 30 << 20))

    stats_call = pl.pallas_call(
        stats_kernel,
        grid=(g_st,),
        in_specs=[blk_st, blk_st],
        out_specs=[partial, partial],
        out_shape=[jax.ShapeDtypeStruct((g_st, 8, 128), jnp.float32),
                   jax.ShapeDtypeStruct((g_st, 8, 128), jnp.float32)],
        compiler_params=pltpu.CompilerParams(
            dimension_semantics=("parallel",), vmem_limit_bytes=vmem_st),
    )

    th_call = pl.pallas_call(
        th_kernel,
        grid=(g_th,),
        in_specs=[pl.BlockSpec(memory_space=pltpu.MemorySpace.SMEM),  # (2,) coeffs
                  blk_th, blk_th],
        out_specs=partial,
        out_shape=jax.ShapeDtypeStruct((g_th, 8, 128), jnp.float32),
        scratch_shapes=[pltpu.VMEM((nb_th, hp, wp), jnp.float32)],
        compiler_params=pltpu.CompilerParams(
            dimension_semantics=("parallel",), vmem_limit_bytes=vmem_th),
    )

    @jax.jit
    def loss_fn(inputs, targets):
        x = inputs.reshape(n, h, w).astype(jnp.float32)
        t = targets.reshape(n, h, w).astype(jnp.float32)
        if n_pad > n:   # zero images contribute ~0 to every partial sum
            padding = ((0, n_pad - n), (0, 0), (0, 0))
            x = jnp.pad(x, padding)
            t = jnp.pad(t, padding)

        se_blk, se2_blk = stats_call(x, t)
        sum_e = jnp.sum(se_blk[:, 0, 0])
        sum_e2 = jnp.sum(se2_blk[:, 0, 0])

        mse = sum_e2 / n_el
        # torch.var default is unbiased (n_el - 1); clamp the one-pass formula
        # so catastrophic cancellation cannot push it slightly negative.
        var = jnp.maximum((sum_e2 - sum_e * sum_e / n_el) / (n_el - 1), 0.0)
        sigma = jnp.sqrt(var)   # NOTE: like the PyTorch module, sigma==0 gives NaN
        scale = jnp.float32(COEFF / SQRT2) / sigma
        coeffs = jnp.stack([scale * jnp.float32(W_DISK + W_RING),
                            scale * jnp.float32(W_RING)]).astype(jnp.float32)

        th_blk = th_call(coeffs, x, t)
        th_sum = jnp.sum(th_blk[:, 0, 0])        # sum of (th_map - 0.5)
        return mse + 0.5 * (0.5 + th_sum / n_el)

    return loss_fn


# -----------------------------------------------------------------------------
# Pure-JAX reference (mirrors the PyTorch forward) for a correctness check.
# -----------------------------------------------------------------------------
def reference_loss(inputs, targets):
    e = (inputs - targets).astype(jnp.float32)            # (N, 1, H, W)
    n_el = e.size
    mse = jnp.mean(e * e)
    var = jnp.sum((e - jnp.mean(e)) ** 2) / (n_el - 1)
    sigma = jnp.sqrt(var)
    comb = jnp.asarray(COMB, dtype=jnp.float32)[None, None]   # OIHW
    diff = lax.conv_general_dilated(
        e, comb, window_strides=(1, 1),
        padding=[(PAD, PAD), (PAD, PAD)],
        dimension_numbers=('NCHW', 'OIHW', 'NCHW'),
        precision=lax.Precision.HIGHEST)
    stat = COEFF * diff / sigma
    sp = 0.5 * _erfc_ref(stat / SQRT2)
    sn = 0.5 * _erfc_ref(-stat / SQRT2)
    th_map = sp ** 2 + sn ** 2
    return mse + 0.5 * jnp.mean(th_map)


if __name__ == "__main__":
    key = jax.random.PRNGKey(0)

    # Config 1: the module-sized smoke test.
    N, C, H, W = 2, 1, 16, 16
    k1, k2 = jax.random.split(key)
    inputs = jax.random.normal(k1, (N, C, H, W), dtype=jnp.float32)
    targets = jax.random.normal(k2, (N, C, H, W), dtype=jnp.float32)
    loss_fn = make_sacontrario_mse_loss(N, H, W)
    out = jax.block_until_ready(loss_fn(inputs, targets))
    ref = jax.block_until_ready(reference_loss(inputs, targets))
    assert jnp.isfinite(out), out
    assert jnp.allclose(out, ref, rtol=2e-3, atol=2e-4), (out, ref)

    # Config 2: odd N exercising multi-image blocks + zero-padded batch tail.
    N2 = 7
    k3, k4 = jax.random.split(k2)
    inputs2 = jax.random.normal(k3, (N2, C, H, W), dtype=jnp.float32)
    targets2 = jax.random.normal(k4, (N2, C, H, W), dtype=jnp.float32)
    loss_fn2 = make_sacontrario_mse_loss(N2, H, W)
    out2 = jax.block_until_ready(loss_fn2(inputs2, targets2))
    ref2 = jax.block_until_ready(reference_loss(inputs2, targets2))
    assert jnp.isfinite(out2), out2
    assert jnp.allclose(out2, ref2, rtol=2e-3, atol=2e-4), (out2, ref2)

    print("KERNEL_OK")
</pallas_src>

<mosaic_0001>
module attributes {stable_mosaic.version = 11 : i64} {
  func.func @stats_kernel(%arg0: i32, %arg1: memref<2x16x16xf32, #tpu.memory_space<vmem>>, %arg2: memref<2x16x16xf32, #tpu.memory_space<vmem>>, %arg3: memref<1x8x128xf32, #tpu.memory_space<vmem>>, %arg4: memref<1x8x128xf32, #tpu.memory_space<vmem>>) attributes {dimension_semantics = [#tpu.dimension_semantics<parallel>], iteration_bounds = array<i64: 1>, scalar_prefetch = 0 : i64, scratch_operands = 0 : i64, tpu.core_type = #tpu.core_type<tc>, window_params = [{transform_indices = @transform_0, window_bounds = array<i64: 2, 16, 16>}, {transform_indices = @transform_1, window_bounds = array<i64: 2, 16, 16>}, {transform_indices = @transform_2, window_bounds = array<i64: 1, 8, 128>}, {transform_indices = @transform_3, window_bounds = array<i64: 1, 8, 128>}]} {
    %c0 = arith.constant 0 : index
    %c0_0 = arith.constant 0 : index
    %c0_1 = arith.constant 0 : index
    %0 = vector.load %arg1[%c0, %c0_0, %c0_1] : memref<2x16x16xf32, #tpu.memory_space<vmem>>, vector<2x16x16xf32>
    %c0_2 = arith.constant 0 : index
    %c0_3 = arith.constant 0 : index
    %c0_4 = arith.constant 0 : index
    %1 = vector.load %arg2[%c0_2, %c0_3, %c0_4] : memref<2x16x16xf32, #tpu.memory_space<vmem>>, vector<2x16x16xf32>
    %2 = arith.subf %0, %1 : vector<2x16x16xf32>
    %3 = vector.shape_cast %2 : vector<2x16x16xf32> to vector<1x2x16x16xf32>
    %cst = arith.constant dense<0.000000e+00> : vector<1xf32>
    %4 = vector.multi_reduction <add>, %3, %cst [1, 2, 3] : vector<1x2x16x16xf32> to vector<1xf32>
    %5 = vector.shape_cast %4 : vector<1xf32> to vector<1x1x1x1xf32>
    %6 = vector.extract %5[0, 0, 0, 0] : f32 from vector<1x1x1x1xf32>
    %7 = vector.broadcast %6 : f32 to vector<1x8x128xf32>
    %c0_5 = arith.constant 0 : index
    %c0_6 = arith.constant 0 : index
    %c0_7 = arith.constant 0 : index
    %8 = vector.load %arg3[%c0_5, %c0_6, %c0_7] : memref<1x8x128xf32, #tpu.memory_space<vmem>>, vector<1x8x128xf32>
    tpu.vector_store %arg3[%c0_5, %c0_6, %c0_7], %7 {strides = array<i32>} : memref<1x8x128xf32, #tpu.memory_space<vmem>>, vector<1x8x128xf32>,
    %9 = arith.mulf %2, %2 : vector<2x16x16xf32>
    %10 = vector.shape_cast %9 : vector<2x16x16xf32> to vector<1x2x16x16xf32>
    %cst_8 = arith.constant dense<0.000000e+00> : vector<1xf32>
    %11 = vector.multi_reduction <add>, %10, %cst_8 [1, 2, 3] : vector<1x2x16x16xf32> to vector<1xf32>
    %12 = vector.shape_cast %11 : vector<1xf32> to vector<1x1x1x1xf32>
    %13 = vector.extract %12[0, 0, 0, 0] : f32 from vector<1x1x1x1xf32>
    %14 = vector.broadcast %13 : f32 to vector<1x8x128xf32>
    %c0_9 = arith.constant 0 : index
    %c0_10 = arith.constant 0 : index
    %c0_11 = arith.constant 0 : index
    %15 = vector.load %arg4[%c0_9, %c0_10, %c0_11] : memref<1x8x128xf32, #tpu.memory_space<vmem>>, vector<1x8x128xf32>
    tpu.vector_store %arg4[%c0_9, %c0_10, %c0_11], %14 {strides = array<i32>} : memref<1x8x128xf32, #tpu.memory_space<vmem>>, vector<1x8x128xf32>,
    return
  }
  func.func @transform_0(%arg0: i32) -> (i32, i32, i32) {
    %c0_i32 = arith.constant 0 : i32
    %c0_i32_0 = arith.constant 0 : i32
    %c0_i32_1 = arith.constant 0 : i32
    return %arg0, %c0_i32, %c0_i32_0 : i32, i32, i32
  }
  func.func @transform_1(%arg0: i32) -> (i32, i32, i32) {
    %c0_i32 = arith.constant 0 : i32
    %c0_i32_0 = arith.constant 0 : i32
    %c0_i32_1 = arith.constant 0 : i32
    return %arg0, %c0_i32, %c0_i32_0 : i32, i32, i32
  }
  func.func @transform_2(%arg0: i32) -> (i32, i32, i32) {
    %c0_i32 = arith.constant 0 : i32
    %c0_i32_0 = arith.constant 0 : i32
    %c0_i32_1 = arith.constant 0 : i32
    return %arg0, %c0_i32, %c0_i32_0 : i32, i32, i32
  }
  func.func @transform_3(%arg0: i32) -> (i32, i32, i32) {
    %c0_i32 = arith.constant 0 : i32
    %c0_i32_0 = arith.constant 0 : i32
    %c0_i32_1 = arith.constant 0 : i32
    return %arg0, %c0_i32, %c0_i32_0 : i32, i32, i32
  }
}

module attributes {stable_mosaic.version = 11 : i64} {
  func.func @th_kernel(%arg0: i32, %arg1: memref<2xf32, #tpu.memory_space<smem>>, %arg2: memref<1x16x16xf32, #tpu.memory_space<vmem>>, %arg3: memref<1x16x16xf32, #tpu.memory_space<vmem>>, %arg4: memref<1x8x128xf32, #tpu.memory_space<vmem>>, %arg5: memref<1x30x30xf32, #tpu.memory_space<vmem>>) attributes {dimension_semantics = [#tpu.dimension_semantics<parallel>], iteration_bounds = array<i64: 2>, scalar_prefetch = 0 : i64, scratch_operands = 1 : i64, tpu.core_type = #tpu.core_type<tc>, window_params = [{transform_indices = @transform_0, window_bounds = array<i64: 2>}, {transform_indices = @transform_1, window_bounds = array<i64: 1, 16, 16>}, {transform_indices = @transform_2, window_bounds = array<i64: 1, 16, 16>}, {transform_indices = @transform_3, window_bounds = array<i64: 1, 8, 128>}]} {
    %cst = arith.constant 0.000000e+00 : f32
    %0 = vector.broadcast %cst : f32 to vector<1x30x30xf32>
    %c0 = arith.constant 0 : index
    %c0_0 = arith.constant 0 : index
    %c0_1 = arith.constant 0 : index
    %1 = vector.load %arg5[%c0, %c0_0, %c0_1] : memref<1x30x30xf32, #tpu.memory_space<vmem>>, vector<1x30x30xf32>
    tpu.vector_store %arg5[%c0, %c0_0, %c0_1], %0 {strides = array<i32>} : memref<1x30x30xf32, #tpu.memory_space<vmem>>, vector<1x30x30xf32>,
    %c0_2 = arith.constant 0 : index
    %c0_3 = arith.constant 0 : index
    %c0_4 = arith.constant 0 : index
    %2 = vector.load %arg2[%c0_2, %c0_3, %c0_4] : memref<1x16x16xf32, #tpu.memory_space<vmem>>, vector<1x16x16xf32>
    %c0_5 = arith.constant 0 : index
    %c0_6 = arith.constant 0 : index
    %c0_7 = arith.constant 0 : index
    %3 = vector.load %arg3[%c0_5, %c0_6, %c0_7] : memref<1x16x16xf32, #tpu.memory_space<vmem>>, vector<1x16x16xf32>
    %4 = arith.subf %2, %3 : vector<1x16x16xf32>
    %c0_8 = arith.constant 0 : index
    %c7 = arith.constant 7 : index
    %c7_9 = arith.constant 7 : index
    %5 = vector.load %arg5[%c0_8, %c7, %c7_9] : memref<1x30x30xf32, #tpu.memory_space<vmem>>, vector<1x16x16xf32>
    tpu.vector_store %arg5[%c0_8, %c7, %c7_9], %4 {strides = array<i32>} : memref<1x30x30xf32, #tpu.memory_space<vmem>>, vector<1x16x16xf32>,
    %c0_10 = arith.constant 0 : index
    %c0_11 = arith.constant 0 : index
    %c0_12 = arith.constant 0 : index
    %6 = vector.load %arg5[%c0_10, %c0_11, %c0_12] : memref<1x30x30xf32, #tpu.memory_space<vmem>>, vector<1x30x30xf32>
    %7 = vector.extract_strided_slice %6 {offsets = [0, 0, 7], sizes = [1, 30, 16], strides = [1, 1, 1]} : vector<1x30x30xf32> to vector<1x30x16xf32>
    %8 = vector.extract_strided_slice %7 {offsets = [0, 0, 0], sizes = [1, 16, 16], strides = [1, 1, 1]} : vector<1x30x16xf32> to vector<1x16x16xf32>
    %9 = vector.extract_strided_slice %7 {offsets = [0, 14, 0], sizes = [1, 16, 16], strides = [1, 1, 1]} : vector<1x30x16xf32> to vector<1x16x16xf32>
    %10 = arith.addf %8, %9 : vector<1x16x16xf32>
    %11 = vector.extract_strided_slice %7 {offsets = [0, 6, 0], sizes = [1, 16, 16], strides = [1, 1, 1]} : vector<1x30x16xf32> to vector<1x16x16xf32>
    %12 = vector.extract_strided_slice %7 {offsets = [0, 8, 0], sizes = [1, 16, 16], strides = [1, 1, 1]} : vector<1x30x16xf32> to vector<1x16x16xf32>
    %13 = arith.addf %11, %12 : vector<1x16x16xf32>
    %14 = vector.extract_strided_slice %6 {offsets = [0, 0, 6], sizes = [1, 30, 16], strides = [1, 1, 1]} : vector<1x30x30xf32> to vector<1x30x16xf32>
    %15 = arith.addf %7, %14 : vector<1x30x16xf32>
    %16 = vector.extract_strided_slice %6 {offsets = [0, 0, 8], sizes = [1, 30, 16], strides = [1, 1, 1]} : vector<1x30x30xf32> to vector<1x30x16xf32>
    %17 = arith.addf %15, %16 : vector<1x30x16xf32>
    %18 = vector.extract_strided_slice %17 {offsets = [0, 7, 0], sizes = [1, 16, 16], strides = [1, 1, 1]} : vector<1x30x16xf32> to vector<1x16x16xf32>
    %19 = arith.addf %13, %18 : vector<1x16x16xf32>
    %20 = vector.extract_strided_slice %6 {offsets = [0, 0, 5], sizes = [1, 30, 16], strides = [1, 1, 1]} : vector<1x30x30xf32> to vector<1x30x16xf32>
    %21 = arith.addf %17, %20 : vector<1x30x16xf32>
    %22 = vector.extract_strided_slice %6 {offsets = [0, 0, 9], sizes = [1, 30, 16], strides = [1, 1, 1]} : vector<1x30x30xf32> to vector<1x30x16xf32>
    %23 = arith.addf %21, %22 : vector<1x30x16xf32>
    %24 = vector.extract_strided_slice %6 {offsets = [0, 0, 4], sizes = [1, 30, 16], strides = [1, 1, 1]} : vector<1x30x30xf32> to vector<1x30x16xf32>
    %25 = arith.addf %23, %24 : vector<1x30x16xf32>
    %26 = vector.extract_strided_slice %6 {offsets = [0, 0, 10], sizes = [1, 30, 16], strides = [1, 1, 1]} : vector<1x30x30xf32> to vector<1x30x16xf32>
    %27 = arith.addf %25, %26 : vector<1x30x16xf32>
    %28 = vector.extract_strided_slice %27 {offsets = [0, 1, 0], sizes = [1, 16, 16], strides = [1, 1, 1]} : vector<1x30x16xf32> to vector<1x16x16xf32>
    %29 = arith.addf %10, %28 : vector<1x16x16xf32>
    %30 = vector.extract_strided_slice %27 {offsets = [0, 13, 0], sizes = [1, 16, 16], strides = [1, 1, 1]} : vector<1x30x16xf32> to vector<1x16x16xf32>
    %31 = arith.addf %29, %30 : vector<1x16x16xf32>
    %32 = vector.extract_strided_slice %6 {offsets = [0, 0, 3], sizes = [1, 30, 16], strides = [1, 1, 1]} : vector<1x30x30xf32> to vector<1x30x16xf32>
    %33 = arith.addf %27, %32 : vector<1x30x16xf32>
    %34 = vector.extract_strided_slice %6 {offsets = [0, 0, 11], sizes = [1, 30, 16], strides = [1, 1, 1]} : vector<1x30x30xf32> to vector<1x30x16xf32>
    %35 = arith.addf %33, %34 : vector<1x30x16xf32>
    %36 = vector.extract_strided_slice %35 {offsets = [0, 2, 0], sizes = [1, 16, 16], strides = [1, 1, 1]} : vector<1x30x16xf32> to vector<1x16x16xf32>
    %37 = arith.addf %31, %36 : vector<1x16x16xf32>
    %38 = vector.extract_strided_slice %35 {offsets = [0, 12, 0], sizes = [1, 16, 16], strides = [1, 1, 1]} : vector<1x30x16xf32> to vector<1x16x16xf32>
    %39 = arith.addf %37, %38 : vector<1x16x16xf32>
    %40 = vector.extract_strided_slice %6 {offsets = [0, 0, 2], sizes = [1, 30, 16], strides = [1, 1, 1]} : vector<1x30x30xf32> to vector<1x30x16xf32>
    %41 = arith.addf %35, %40 : vector<1x30x16xf32>
    %42 = vector.extract_strided_slice %6 {offsets = [0, 0, 12], sizes = [1, 30, 16], strides = [1, 1, 1]} : vector<1x30x30xf32> to vector<1x30x16xf32>
    %43 = arith.addf %41, %42 : vector<1x30x16xf32>
    %44 = vector.extract_strided_slice %43 {offsets = [0, 3, 0], sizes = [1, 16, 16], strides = [1, 1, 1]} : vector<1x30x16xf32> to vector<1x16x16xf32>
    %45 = arith.addf %39, %44 : vector<1x16x16xf32>
    %46 = vector.extract_strided_slice %43 {offsets = [0, 11, 0], sizes = [1, 16, 16], strides = [1, 1, 1]} : vector<1x30x16xf32> to vector<1x16x16xf32>
    %47 = arith.addf %45, %46 : vector<1x16x16xf32>
    %48 = vector.extract_strided_slice %6 {offsets = [0, 0, 1], sizes = [1, 30, 16], strides = [1, 1, 1]} : vector<1x30x30xf32> to vector<1x30x16xf32>
    %49 = arith.addf %43, %48 : vector<1x30x16xf32>
    %50 = vector.extract_strided_slice %6 {offsets = [0, 0, 13], sizes = [1, 30, 16], strides = [1, 1, 1]} : vector<1x30x30xf32> to vector<1x30x16xf32>
    %51 = arith.addf %49, %50 : vector<1x30x16xf32>
    %52 = vector.extract_strided_slice %51 {offsets = [0, 4, 0], sizes = [1, 16, 16], strides = [1, 1, 1]} : vector<1x30x16xf32> to vector<1x16x16xf32>
    %53 = arith.addf %47, %52 : vector<1x16x16xf32>
    %54 = vector.extract_strided_slice %51 {offsets = [0, 5, 0], sizes = [1, 16, 16], strides = [1, 1, 1]} : vector<1x30x16xf32> to vector<1x16x16xf32>
    %55 = arith.addf %53, %54 : vector<1x16x16xf32>
    %56 = vector.extract_strided_slice %51 {offsets = [0, 6, 0], sizes = [1, 16, 16], strides = [1, 1, 1]} : vector<1x30x16xf32> to vector<1x16x16xf32>
    %57 = arith.addf %55, %56 : vector<1x16x16xf32>
    %58 = vector.extract_strided_slice %51 {offsets = [0, 8, 0], sizes = [1, 16, 16], strides = [1, 1, 1]} : vector<1x30x16xf32> to vector<1x16x16xf32>
    %59 = arith.addf %57, %58 : vector<1x16x16xf32>
    %60 = vector.extract_strided_slice %51 {offsets = [0, 9, 0], sizes = [1, 16, 16], strides = [1, 1, 1]} : vector<1x30x16xf32> to vector<1x16x16xf32>
    %61 = arith.addf %59, %60 : vector<1x16x16xf32>
    %62 = vector.extract_strided_slice %51 {offsets = [0, 10, 0], sizes = [1, 16, 16], strides = [1, 1, 1]} : vector<1x30x16xf32> to vector<1x16x16xf32>
    %63 = arith.addf %61, %62 : vector<1x16x16xf32>
    %64 = vector.extract_strided_slice %6 {offsets = [0, 0, 0], sizes = [1, 30, 16], strides = [1, 1, 1]} : vector<1x30x30xf32> to vector<1x30x16xf32>
    %65 = arith.addf %51, %64 : vector<1x30x16xf32>
    %66 = vector.extract_strided_slice %6 {offsets = [0, 0, 14], sizes = [1, 30, 16], strides = [1, 1, 1]} : vector<1x30x30xf32> to vector<1x30x16xf32>
    %67 = arith.addf %65, %66 : vector<1x30x16xf32>
    %68 = vector.extract_strided_slice %67 {offsets = [0, 7, 0], sizes = [1, 16, 16], strides = [1, 1, 1]} : vector<1x30x16xf32> to vector<1x16x16xf32>
    %69 = arith.addf %63, %68 : vector<1x16x16xf32>
    %c0_13 = arith.constant 0 : index
    %70 = memref.load %arg1[%c0_13] : memref<2xf32, #tpu.memory_space<smem>>
    %71 = vector.broadcast %70 : f32 to vector<1x16x16xf32>
    %72 = arith.mulf %71, %19 : vector<1x16x16xf32>
    %c1 = arith.constant 1 : index
    %73 = memref.load %arg1[%c1] : memref<2xf32, #tpu.memory_space<smem>>
    %74 = vector.broadcast %73 : f32 to vector<1x16x16xf32>
    %75 = arith.mulf %74, %69 : vector<1x16x16xf32>
    %76 = arith.subf %72, %75 : vector<1x16x16xf32>
    %77 = math.absf %76 : vector<1x16x16xf32>
    %cst_14 = arith.constant 0.327591091 : f32
    %78 = vector.broadcast %cst_14 : f32 to vector<1x16x16xf32>
    %79 = arith.mulf %78, %77 : vector<1x16x16xf32>
    %cst_15 = arith.constant 1.000000e+00 : f32
    %80 = vector.broadcast %cst_15 : f32 to vector<1x16x16xf32>
    %81 = arith.addf %80, %79 : vector<1x16x16xf32>
    %82 = tpu.reciprocal %81 {approx = true} : vector<1x16x16xf32> -> vector<1x16x16xf32>
    %83 = arith.mulf %81, %82 : vector<1x16x16xf32>
    %cst_16 = arith.constant 2.000000e+00 : f32
    %84 = vector.broadcast %cst_16 : f32 to vector<1x16x16xf32>
    %85 = arith.subf %84, %83 : vector<1x16x16xf32>
    %86 = arith.mulf %82, %85 : vector<1x16x16xf32>
    %cst_17 = arith.constant 1.06140542 : f32
    %87 = vector.broadcast %cst_17 : f32 to vector<1x16x16xf32>
    %88 = arith.mulf %86, %87 : vector<1x16x16xf32>
    %cst_18 = arith.constant -1.45315206 : f32
    %89 = vector.broadcast %cst_18 : f32 to vector<1x16x16xf32>
    %90 = arith.addf %89, %88 : vector<1x16x16xf32>
    %91 = arith.mulf %86, %90 : vector<1x16x16xf32>
    %cst_19 = arith.constant 1.42141378 : f32
    %92 = vector.broadcast %cst_19 : f32 to vector<1x16x16xf32>
    %93 = arith.addf %92, %91 : vector<1x16x16xf32>
    %94 = arith.mulf %86, %93 : vector<1x16x16xf32>
    %cst_20 = arith.constant -0.284496725 : f32
    %95 = vector.broadcast %cst_20 : f32 to vector<1x16x16xf32>
    %96 = arith.addf %95, %94 : vector<1x16x16xf32>
    %97 = arith.mulf %86, %96 : vector<1x16x16xf32>
    %cst_21 = arith.constant 0.254829586 : f32
    %98 = vector.broadcast %cst_21 : f32 to vector<1x16x16xf32>
    %99 = arith.addf %98, %97 : vector<1x16x16xf32>
    %100 = arith.mulf %86, %99 : vector<1x16x16xf32>
    %101 = arith.mulf %77, %77 : vector<1x16x16xf32>
    %cst_22 = arith.constant 0.000000e+00 : f32
    %102 = vector.broadcast %cst_22 : f32 to vector<1x16x16xf32>
    %103 = arith.subf %102, %101 : vector<1x16x16xf32>
    %104 = math.exp %103 : vector<1x16x16xf32>
    %105 = arith.mulf %100, %104 : vector<1x16x16xf32>
    %cst_23 = arith.constant 1.000000e+00 : f32
    %106 = vector.broadcast %cst_23 : f32 to vector<1x16x16xf32>
    %107 = arith.subf %106, %105 : vector<1x16x16xf32>
    %108 = arith.mulf %107, %107 : vector<1x16x16xf32>
    %cst_24 = arith.constant 5.000000e-01 : f32
    %109 = vector.broadcast %cst_24 : f32 to vector<1x16x16xf32>
    %110 = arith.mulf %109, %108 : vector<1x16x16xf32>
    %111 = vector.shape_cast %110 : vector<1x16x16xf32> to vector<1x1x16x16xf32>
    %cst_25 = arith.constant dense<0.000000e+00> : vector<1xf32>
    %112 = vector.multi_reduction <add>, %111, %cst_25 [1, 2, 3] : vector<1x1x16x16xf32> to vector<1xf32>
    %113 = vector.shape_cast %112 : vector<1xf32> to vector<1x1x1x1xf32>
    %114 = vector.extract %113[0, 0, 0, 0] : f32 from vector<1x1x1x1xf32>
    %115 = vector.broadcast %114 : f32 to vector<1x8x128xf32>
    %c0_26 = arith.constant 0 : index
    %c0_27 = arith.constant 0 : index
    %c0_28 = arith.constant 0 : index
    %116 = vector.load %arg4[%c0_26, %c0_27, %c0_28] : memref<1x8x128xf32, #tpu.memory_space<vmem>>, vector<1x8x128xf32>
    tpu.vector_store %arg4[%c0_26, %c0_27, %c0_28], %115 {strides = array<i32>} : memref<1x8x128xf32, #tpu.memory_space<vmem>>, vector<1x8x128xf32>,
    return
  }
  func.func @transform_0(%arg0: i32) -> i32 {
    %c0_i32 = arith.constant 0 : i32
    %c0_i32_0 = arith.constant 0 : i32
    return %c0_i32 : i32
  }
  func.func @transform_1(%arg0: i32) -> (i32, i32, i32) {
    %c0_i32 = arith.constant 0 : i32
    %c0_i32_0 = arith.constant 0 : i32
    %c0_i32_1 = arith.constant 0 : i32
    return %arg0, %c0_i32, %c0_i32_0 : i32, i32, i32
  }
  func.func @transform_2(%arg0: i32) -> (i32, i32, i32) {
    %c0_i32 = arith.constant 0 : i32
    %c0_i32_0 = arith.constant 0 : i32
    %c0_i32_1 = arith.constant 0 : i32
    return %arg0, %c0_i32, %c0_i32_0 : i32, i32, i32
  }
  func.func @transform_3(%arg0: i32) -> (i32, i32, i32) {
    %c0_i32 = arith.constant 0 : i32
    %c0_i32_0 = arith.constant 0 : i32
    %c0_i32_1 = arith.constant 0 : i32
    return %arg0, %c0_i32, %c0_i32_0 : i32, i32, i32
  }
}

</mosaic_0001>

<bundles_post_ra>
// kernel: loss_fn.2
= control target key start
LH: loop header
LB: loop body
LE: loop exit
PB: predicated region body
PF: predicated region fallthrough
CT: control target
= control target key end

     0   :  { %9 = vsyncpa [#allocation3], 0  ;;  %s200_s0 = inlined_call_operand.hbm [shape: f32[2,16,16], index: 0, kind: input, shape index: {}]   ;;  %s201_s1 = inlined_call_operand.hbm [shape: f32[2,16,16], index: 1, kind: input, shape index: {}]   ;;  %s202_s2 = inlined_call_operand.vmem [shape: f32[1,8,128], index: 2, kind: output, shape index: {0}]   ;;  %s203_s3 = inlined_call_operand.vmem [shape: f32[1,8,128], index: 3, kind: output, shape index: {1}]  }
   0x1   :  { %10 = vsyncpa [#allocation5], 0  ;;  %s156_s12 = smov [#allocation2]  }
   0x2   :  { %s16_s13 = sshll.u32 %s156_s12, 4  ;;  %s17_s13 = int_to_ptr.vmem [resolvable:$true] %s16_s13 }
   0x3   :  { %s120_s14 = scalar_lea.vmem %s17_s13, 512  ;;  %p125_p1 = scmp.lt.s32.totalorder %s17_s13, %s17_s13 }
   0x4   :  { %p121_p0 = scmp.ne.s32.totalorder %s17_s13, %s120_s14  ;;  %p126_p2 = scmp.lt.s32.totalorder %s120_s14, %s120_s14 }
   0x6   :  { %p127_p3 = por %p126_p2, %p125_p1 }
   0x8   :  { %p128_p4 = pnand %p127_p3, %p121_p0 }
   0xa   :  { %131 = shalt.err (!%p128_p4)
}
   0xb   :  { %s157_s15 = smov 128   ;;  %s158_s16 = smov 8  }
   0xc   :  { %22 = dma.hbm_to_vmem [thread:$0]  %s200_s0, 512, %s17_s13, [#allocation3], %s157_s15, %s157_s15, %s158_s16  }
   0xd   :  { %s159_s19 = smov [#allocation4]  }
   0xe   :  { %s28_s20 = sshll.u32 %s159_s19, 4  ;;  %s29_s20 = int_to_ptr.vmem [resolvable:$true] %s28_s20 }
   0xf   :  { %s140_s21 = scalar_lea.vmem %s29_s20, 512  ;;  %p145_p6 = scmp.lt.s32.totalorder %s29_s20, %s29_s20 }
  0x10   :  { %p141_p5 = scmp.ne.s32.totalorder %s29_s20, %s140_s21  ;;  %p146_p7 = scmp.lt.s32.totalorder %s140_s21, %s140_s21 }
  0x12   :  { %p147_p8 = por %p146_p7, %p145_p6 }
  0x14   :  { %p148_p9 = pnand %p147_p8, %p141_p5 }
  0x16   :  { %151 = shalt.err (!%p148_p9)
}
  0x17   :  { %34 = dma.hbm_to_vmem [thread:$0]  %s201_s1, 512, %s29_s20, [#allocation5], %s157_s15, %s157_s15, %s158_s16  }
  0x18   :  { %152 = dma.done.wait [#allocation3], 512  }
  0x19   :  { %153 = vsyncadd [#allocation3], 4294966784 }
  0x1a   :  { %154 = dma.done.wait [#allocation5], 512  }
  0x1b   :  { %155 = vsyncadd [#allocation5], 4294966784  ;;  %v41_v0 = vld [vmem:[#allocation2] sm:$0xff]  ;;  %v42_v1 = vld [vmem:[#allocation2 + $0x8] sm:$0xff]  ;;  %vm53_vm0 = vcmask 130048  }
  0x1c   :  { %v43_v2 = vld [vmem:[#allocation2 + $0x10] sm:$0xff]  ;;  %v44_v3 = vld [vmem:[#allocation2 + $0x18] sm:$0xff]  ;;  %v45_v4 = vld [vmem:[#allocation4] sm:$0xff] }
  0x1d   :  { %v46_v5 = vld [vmem:[#allocation4 + $0x8] sm:$0xff]  ;;  %v47_v6 = vld [vmem:[#allocation4 + $0x10] sm:$0xff]  ;;  %v48_v7 = vld [vmem:[#allocation4 + $0x18] sm:$0xff]  ;;  %v49_v8 = vsub.f32 %v41_v0, %v45_v4 }
  0x1e   :  { %v50_v9 = vsub.f32 %v42_v1, %v46_v5  ;;  %v51_v10 = vsub.f32 %v43_v2, %v47_v6  ;;  %v52_v11 = vsub.f32 %v44_v3, %v48_v7 }
  0x1f   :  { %v54_v12 = vsel %vm53_vm0, %v49_v8, 0.0  ;;  %v72_v14 = vmul.f32 %v49_v8, %v49_v8 }
  0x20   :  { %v55_v13 = vsel %vm53_vm0, %v50_v9, 0.0  ;;  %v73_v15 = vmul.f32 %v50_v9, %v50_v9  ;;  %v57_v17 = vsel %vm53_vm0, %v51_v10, 0.0  ;;  %v74_v18 = vmul.f32 %v51_v10, %v51_v10 }
  0x21   :  { %v56_v16 = vadd.f32 %v55_v13, %v54_v12  ;;  %v59_v19 = vsel %vm53_vm0, %v52_v11, 0.0  ;;  %v75_v20 = vmul.f32 %v52_v11, %v52_v11  ;;  %v76_v21 = vsel %vm53_vm0, %v72_v14, 0.0 }
  0x22   :  { %v77_v22 = vsel %vm53_vm0, %v73_v15, 0.0  ;;  %v79_v25 = vsel %vm53_vm0, %v74_v18, 0.0 }
  0x23   :  { %v58_v23 = vadd.f32 %v57_v17, %v56_v16  ;;  %v78_v24 = vadd.f32 %v77_v22, %v76_v21  ;;  %v81_v26 = vsel %vm53_vm0, %v75_v20, 0.0 }
  0x25   :  { %v60_v27 = vadd.f32 %v59_v19, %v58_v23  ;;  %v80_v28 = vadd.f32 %v79_v25, %v78_v24 }
  0x27   :  { %61 = vadd.xlane.f32.xlu0 %v60_v27  ;;  %v82_v29 = vadd.f32 %v81_v26, %v80_v28 }
  0x2b   :  { %83 = vadd.xlane.f32.xlu0 %v82_v29 }
  0xb0   :  { %v62_v30 = vpop.xlane.xlu0 %61 }
  0xb1   :  { %v63_v31 = vrot.slane %v62_v30, 4 }
  0xb3   :  { %v64_v32 = vadd.f32 %v63_v31, %v62_v30 }
  0xb4   :  { %v84_v33 = vpop.xlane.xlu0 %83 }
  0xb5   :  { %v65_v34 = vrot.slane %v64_v32, 2  ;;  %v85_v35 = vrot.slane %v84_v33, 4 }
  0xb7   :  { %v86_v36 = vadd.f32 %v85_v35, %v84_v33  ;;  %v66_v37 = vadd.f32 %v65_v34, %v64_v32 }
  0xb9   :  { %v87_v38 = vrot.slane %v86_v36, 2  ;;  %v67_v39 = vrot.slane %v66_v37, 1 }
  0xbb   :  { %v88_v40 = vadd.f32 %v87_v38, %v86_v36  ;;  %v68_v41 = vadd.f32 %v67_v39, %v66_v37 }
  0xbd   :  { %104 = vpush %v68_v41  ;;  %v89_v42 = vrot.slane %v88_v40, 1 }
  0xbf   :  { %v90_v43 = vadd.f32 %v89_v42, %v88_v40 }
  0xc1   :  { %106 = vpush %v90_v43 }
  0xee   :  { %s105_s0 = spop %104 }
  0xef   :  { %v70_v44 = vstv %s105_s0 }
  0xf0   :  { %71 = vst [vmem:[%s202_s2] sm:$0xff] %v70_v44 }
  0xf2   :  { %s107_s25 = spop %106 }
  0xf3   :  { %v92_v45 = vstv %s107_s25 }
  0xf4   :  { %93 = vst [vmem:[%s203_s3] sm:$0xff] %v92_v45 }
  0xf5   :  { %102 = vsyncpa [#allocation3], 1 }
  0xf6   :  { %103 = vsyncpa [#allocation5], 1 }

// kernel: loss_fn.3
= control target key start
LH: loop header
LB: loop body
LE: loop exit
PB: predicated region body
PF: predicated region fallthrough
CT: control target
= control target key end

     0   :  { %8 = vsyncpa [#allocation4], 0  ;;  %s940_s12 = smov 0   ;;  %s1216_s0 = inlined_call_operand.vmem [shape: f32[2], index: 0, kind: input, shape index: {}]   ;;  %s1217_s1 = inlined_call_operand.vmem [shape: f32[2,16,16], index: 1, kind: input, shape index: {}]   ;;  %s1218_s2 = inlined_call_operand.vmem [shape: f32[2,16,16], index: 2, kind: input, shape index: {}]   ;;  %s1219_s3 = inlined_call_operand.vmem [shape: f32[2,8,128], index: 3, kind: output, shape index: {}]  }
   0x1 LB: > { %s946_s13 = sadd.s32 4294967295, %s902_s12   ;;  %p814_p0 = scmp.ge.s32.totalorder %s902_s12, 1  ;;  %s902_s12 = sphi %s940_s12, %s14_s12  }
   0x2   : > { %p118_p1 = scmp.lt.s32.totalorder %s902_s12, 3  ;;  %s131_s16 = sshll.u32 %s1216_s0, 4  ;;  %s132_s16 = int_to_ptr.vmem [resolvable:$true] %s131_s16 }
   0x3   : > { %p839_p3 = scmp.eq.s32.totalorder %s946_s13, 0  ;;  %s877_s18 = scalar_lea.vmem %s132_s16, 16 }
   0x4   : > { %p953_p2 = pnand %p814_p0, %p118_p1  ;;  %p878_p6 = scmp.ne.s32.totalorder %s132_s16, %s877_s18 }
   0x5   : > { %p885_p10 = scmp.lt.s32.totalorder %s132_s16, %s132_s16  ;;  %p886_p11 = scmp.lt.s32.totalorder %s877_s18, %s877_s18 }
   0x6   : > { %p835_p4 = pneg %p953_p2 }
   0x7   : > { %p887_p12 = por %p886_p11, %p885_p10 }
   0x8   : > { %p836_p5 = pnand %p839_p3, %p835_p4 }
   0xa   : > { %p879_p7 = pneg %p836_p5 }
   0xc   : > { %p880_p8 = pnand %p879_p7, %p878_p6 }
   0xe   : > { %p881_p9 = pneg %p880_p8 }
  0x10   : > { %p888_p13 = pnand %p887_p12, %p881_p9 }
  0x12   : > { %891 = shalt.err (!%p888_p13)
}
  0x13   : > { %s904_s19 = smov [#allocation3]   ;;  %160 = sbr.rel (%p953_p2) target bundleno = 764 (0x2fc), region = 32 }
  0x14   : > { %838 = dma.vmem_to_smem (!%p836_p5), %s132_s16, 16, %s904_s19, [#allocation4]  }
  0x18   : > { %897 = dma.done.wait (%p839_p3), [#allocation4], 16  }
  0x19   : > { %899 = vsyncadd (%p839_p3), [#allocation4], 4294967280 }
  0x1a   : > { %166 = sfence }
  0x1b   : > { %p189_p0 = scmp.lt.s32.totalorder %s946_s13, 1  ;;  %vm207_vm0 = vcmask 242688   ;;  %vm203_vm1 = vcmask 244736   ;;  %v905_v0 = vmov 0.0   ;;  %s906_s27 = smov 7   ;;  %vm223_vm2 = vcmask 187448  }
  0x1c   : > { %208 = vst.msk [vmem:[#allocation2 + $0x18] sm:$0x3f] %vm207_vm0, %v905_v0  ;;  %s907_s28 = smov 1   ;;  %s908_s29 = smov 127   ;;  %vm233_vm3 = vcmask 1041408   ;;  %vm289_vm4 = vcmask 1046528  }
  0x1d   : > { %204 = vst.msk [vmem:[#allocation2] sm:$0xff] %vm203_vm1, %v905_v0  ;;  %205 = vst.msk [vmem:[#allocation2 + $0x8] sm:$0xff] %vm203_vm1, %v905_v0  ;;  %s1222_s13 = smov (!%p189_p0, %s946_s13), 1  ;;  %s909_s30 = smov 2   ;;  %vm378_vm5 = vcmask 1042432   ;;  %vm243_vm6 = vcmask 1045504  }
  0x1e   : > { %206 = vst.msk [vmem:[#allocation2 + $0x10] sm:$0xff] %vm203_vm1, %v905_v0  ;;  %s827_s20 = sshll.u32 %s1222_s13, 4  ;;  %s910_s4 = smov 6   ;;  %vm433_vm7 = vcmask 1043456   ;;  %vm478_vm8 = vcmask 1044480   ;;  %vm604_vm9 = vcmask 1040384  }
  0x1f   : > { %s193_s23 = scalar_lea.vmem %s1217_s1, %s827_s20  ;;  %s198_s26 = scalar_lea.vmem %s1218_s2, %s827_s20  ;;  %vm720_vm10 = vcmask 130048  }
  0x20   : > { %v209_v1 = vld [vmem:[%s193_s23] sm:$0xff]  ;;  %v210_v2 = vld [vmem:[%s193_s23 + $0x8] sm:$0xff]  ;;  %s911_s5 = smov 126   ;;  %s912_s6 = smov 3  }
  0x21   : > { %v211_v3 = vld [vmem:[%s198_s26] sm:$0xff]  ;;  %v212_v4 = vld [vmem:[%s198_s26 + $0x8] sm:$0xff]  ;;  %s913_s7 = smov 125   ;;  %s914_s8 = smov 4  }
  0x22   : > { %v213_v5 = vsub.f32 %v209_v1, %v211_v3  ;;  %v214_v7 = vsub.f32 %v210_v2, %v212_v4  ;;  %s915_s9 = smov 124   ;;  %s916_s10 = smov 5  }
  0x23   : > { %v979_v6 = vld [vmem:[#allocation2 + $0x18] sm:$0x3f]  ;;  %s917_s11 = smov 123   ;;  %s918_s14 = smov 122  }
  0x24   : > { %217 = vrot.lane.b32.xlu0 %v213_v5, %s906_s27  ;;  %260 = vrot.lane.b32.xlu1 %v979_v6, %s907_s28  ;;  %s919_s15 = smov 121   ;;  %s1180_s16 = sld [smem:[#allocation3 + $0x1]] }
  0x25   : > { %s1184_s17 = sld [smem:[#allocation3]]  ;;  %s823_s18 = sshll.u32 %s1222_s13, 3 }
  0x26   : > { %s202_s21 = scalar_lea.vmem %s1219_s3, %s823_s18 }
  0x28   : > { %219 = vrot.lane.b32.xlu0 %v214_v7, %s906_s27  ;;  %276 = vrot.lane.b32.xlu1 %v979_v6, %s908_s29 }
  0x2c   : > { %307 = vrot.lane.b32.xlu1 %v979_v6, %s909_s30  ;;  %500 = vrot.lane.b32.xlu0 %v979_v6, %s910_s4 }
  0x30   : > { %323 = vrot.lane.b32.xlu1 %v979_v6, %s911_s5 }
  0x34   : > { %339 = vrot.lane.b32.xlu1 %v979_v6, %s912_s6 }
  0x38   : > { %355 = vrot.lane.b32.xlu1 %v979_v6, %s913_s7 }
  0x3c   : > { %394 = vrot.lane.b32.xlu1 %v979_v6, %s914_s8 }
  0x40   : > { %410 = vrot.lane.b32.xlu1 %v979_v6, %s915_s9 }
  0x44   : > { %449 = vrot.lane.b32.xlu1 %v979_v6, %s916_s10 }
  0x48   : > { %465 = vrot.lane.b32.xlu1 %v979_v6, %s917_s11 }
  0x4c   : > { %516 = vrot.lane.b32.xlu1 %v979_v6, %s918_s14 }
  0x96   : > { %v218_v8 = vpop.permute.xlu0 %217  ;;  %v261_v9 = vpop.permute.xlu1 %260 }
  0x97   : > { %224 = vst.msk [vmem:[#allocation2 + $0x7] sm:$0xff] %vm223_vm2, %v218_v8  ;;  %v269_v10 = vadd.f32 %v261_v9, %v979_v6  ;;  %v237_v8 = vrot.slane %v979_v6, 6 }
  0x9a   : > { %v220_v11 = vpop.permute.xlu0 %219  ;;  %v277_v12 = vpop.permute.xlu1 %276 }
  0x9b   : > { %225 = vst.msk [vmem:[#allocation2 + $0xf] sm:$0xff] %vm223_vm2, %v220_v11  ;;  %v285_v13 = vadd.f32 %v277_v12, %v269_v10 }
  0x9e   : > { %v1008_v14 = vld [vmem:[#allocation2] sm:$0xff]  ;;  %v308_v15 = vpop.permute.xlu1 %307  ;;  %v501_v32 = vpop.permute.xlu0 %500 }
  0x9f   : > { %254 = vrot.lane.b32.xlu1 %v1008_v14, %s907_s28  ;;  %v316_v16 = vadd.f32 %v308_v15, %v285_v13 }
  0xa2   : > { %v1012_v17 = vld [vmem:[#allocation2 + $0x8] sm:$0xff]  ;;  %v1014_v18 = vld [vmem:[#allocation2 + $0x10] sm:$0xff]  ;;  %v324_v19 = vpop.permute.xlu1 %323 }
  0xa3   : > { %258 = vrot.lane.b32.xlu0 %v1014_v18, %s907_s28  ;;  %256 = vrot.lane.b32.xlu1 %v1012_v17, %s907_s28  ;;  %v332_v20 = vadd.f32 %v324_v19, %v316_v16  ;;  %v235_v7 = vrot.slane %v1014_v18, 6 }
  0xa5   : > { %v238_v12 = vsel %vm233_vm3, %v235_v7, %v237_v8 }
  0xa6   : > { %v340_v21 = vpop.permute.xlu1 %339 }
  0xa7   : > { %270 = vrot.lane.b32.xlu0 %v1008_v14, %s908_s29  ;;  %272 = vrot.lane.b32.xlu1 %v1012_v17, %s908_s29  ;;  %v348_v22 = vadd.f32 %v340_v21, %v332_v20  ;;  %v242_v20 = vadd.f32 %v238_v12, %v1012_v17 }
  0xaa   : > { %v356_v23 = vpop.permute.xlu1 %355 }
  0xab   : > { %274 = vrot.lane.b32.xlu0 %v1014_v18, %s908_s29  ;;  %303 = vrot.lane.b32.xlu1 %v1012_v17, %s909_s30  ;;  %v1028_v24 = vadd.f32 %v356_v23, %v348_v22 }
  0xae   : > { %v395_v25 = vpop.permute.xlu1 %394 }
  0xaf   : > { %301 = vrot.lane.b32.xlu0 %v1008_v14, %s909_s30  ;;  %319 = vrot.lane.b32.xlu1 %v1012_v17, %s911_s5  ;;  %v403_v26 = vadd.f32 %v395_v25, %v1028_v24 }
  0xb2   : > { %v411_v27 = vpop.permute.xlu1 %410 }
  0xb3   : > { %305 = vrot.lane.b32.xlu0 %v1014_v18, %s909_s30  ;;  %335 = vrot.lane.b32.xlu1 %v1012_v17, %s912_s6  ;;  %v1039_v28 = vadd.f32 %v411_v27, %v403_v26  ;;  %v382_v27 = vrot.slane %v1028_v24, 5 }
  0xb6   : > { %v450_v29 = vpop.permute.xlu1 %449 }
  0xb7   : > { %317 = vrot.lane.b32.xlu0 %v1008_v14, %s911_s5  ;;  %351 = vrot.lane.b32.xlu1 %v1012_v17, %s913_s7  ;;  %v458_v30 = vadd.f32 %v450_v29, %v1039_v28 }
  0xba   : > { %v466_v31 = vpop.permute.xlu1 %465 }
  0xbb   : > { %321 = vrot.lane.b32.xlu0 %v1014_v18, %s911_s5  ;;  %390 = vrot.lane.b32.xlu1 %v1012_v17, %s914_s8  ;;  %v1050_v33 = vadd.f32 %v466_v31, %v458_v30 }
  0xbd   : > { %v509_v34 = vadd.f32 %v501_v32, %v1050_v33 }
  0xbe   : > { %v517_v35 = vpop.permute.xlu1 %516 }
  0xbf   : > { %333 = vrot.lane.b32.xlu0 %v1008_v14, %s912_s6  ;;  %406 = vrot.lane.b32.xlu1 %v1012_v17, %s915_s9  ;;  %v1057_v36 = vadd.f32 %v517_v35, %v509_v34 }
  0xc3   : > { %337 = vrot.lane.b32.xlu0 %v1014_v18, %s912_s6  ;;  %445 = vrot.lane.b32.xlu1 %v1012_v17, %s916_s10 }
  0xc7   : > { %349 = vrot.lane.b32.xlu0 %v1008_v14, %s913_s7  ;;  %461 = vrot.lane.b32.xlu1 %v1012_v17, %s917_s11 }
  0xcb   : > { %353 = vrot.lane.b32.xlu0 %v1014_v18, %s913_s7  ;;  %496 = vrot.lane.b32.xlu1 %v1012_v17, %s910_s4 }
  0xcf   : > { %388 = vrot.lane.b32.xlu0 %v1008_v14, %s914_s8  ;;  %510 = vrot.lane.b32.xlu1 %v1008_v14, %s918_s14 }
  0xd3   : > { %392 = vrot.lane.b32.xlu0 %v1014_v18, %s914_s8  ;;  %514 = vrot.lane.b32.xlu1 %v1014_v18, %s918_s14 }
  0xd7   : > { %404 = vrot.lane.b32.xlu0 %v1008_v14, %s915_s9  ;;  %579 = vrot.lane.b32.xlu1 %v1012_v17, %s906_s27 }
  0xdb   : > { %408 = vrot.lane.b32.xlu0 %v1014_v18, %s915_s9  ;;  %589 = vrot.lane.b32.xlu1 %v1008_v14, %s919_s15 }
  0xdf   : > { %443 = vrot.lane.b32.xlu0 %v1008_v14, %s916_s10  ;;  %593 = vrot.lane.b32.xlu1 %v1014_v18, %s919_s15 }
  0xe3   : > { %447 = vrot.lane.b32.xlu0 %v1014_v18, %s916_s10 }
  0xe7   : > { %459 = vrot.lane.b32.xlu0 %v1008_v14, %s917_s11 }
  0xeb   : > { %463 = vrot.lane.b32.xlu0 %v1014_v18, %s917_s11 }
  0xef   : > { %494 = vrot.lane.b32.xlu0 %v1008_v14, %s910_s4 }
  0xf3   : > { %498 = vrot.lane.b32.xlu0 %v1014_v18, %s910_s4 }
  0xf7   : > { %512 = vrot.lane.b32.xlu0 %v1012_v17, %s918_s14 }
  0xfb   : > { %577 = vrot.lane.b32.xlu0 %v1008_v14, %s906_s27 }
  0xff   : > { %581 = vrot.lane.b32.xlu0 %v1014_v18, %s906_s27 }
 0x103   : > { %591 = vrot.lane.b32.xlu0 %v1012_v17, %s919_s15 }
 0x111   : > { %v255_v37 = vpop.permute.xlu1 %254 }
 0x112   : > { %v266_v23 = vadd.f32 %v255_v37, %v1008_v14  ;;  %v437_v37 = vrot.slane %v1039_v28, 4 }
 0x115   : > { %v259_v38 = vpop.permute.xlu0 %258  ;;  %v257_v39 = vpop.permute.xlu1 %256 }
 0x116   : > { %v268_v53 = vadd.f32 %v259_v38, %v1014_v18  ;;  %v267_v55 = vadd.f32 %v257_v39, %v1012_v17 }
 0x119   : > { %v271_v40 = vpop.permute.xlu0 %270  ;;  %v273_v42 = vpop.permute.xlu1 %272 }
 0x11a   : > { %v1113_v57 = vadd.f32 %v273_v42, %v267_v55  ;;  %v1135_v30 = vadd.f32 %v271_v40, %v266_v23 }
 0x11d   : > { %v275_v41 = vpop.permute.xlu0 %274  ;;  %v304_v44 = vpop.permute.xlu1 %303 }
 0x11e   : > { %v1111_v56 = vadd.f32 %v275_v41, %v268_v53  ;;  %v314_v61 = vadd.f32 %v304_v44, %v1113_v57 }
 0x121   : > { %v302_v43 = vpop.permute.xlu0 %301  ;;  %v320_v47 = vpop.permute.xlu1 %319 }
 0x122   : > { %v330_v63 = vadd.f32 %v320_v47, %v314_v61  ;;  %v313_v42 = vadd.f32 %v302_v43, %v1135_v30 }
 0x125   : > { %v306_v45 = vpop.permute.xlu0 %305  ;;  %v336_v49 = vpop.permute.xlu1 %335 }
 0x126   : > { %v315_v58 = vadd.f32 %v306_v45, %v1111_v56  ;;  %v346_v2 = vadd.f32 %v336_v49, %v330_v63 }
 0x129   : > { %v318_v46 = vpop.permute.xlu0 %317  ;;  %v352_v52 = vpop.permute.xlu1 %351 }
 0x12a   : > { %v1119_v5 = vadd.f32 %v352_v52, %v346_v2  ;;  %v329_v40 = vadd.f32 %v318_v46, %v313_v42 }
 0x12c   : > { %v369_v11 = vrot.slane %v1119_v5, 1 }
 0x12d   : > { %v322_v48 = vpop.permute.xlu0 %321  ;;  %v391_v59 = vpop.permute.xlu1 %390 }
 0x12e   : > { %v331_v62 = vadd.f32 %v322_v48, %v315_v58  ;;  %v401_v16 = vadd.f32 %v391_v59, %v1119_v5  ;;  %v234_v58 = vrot.slane %v1012_v17, 6 }
 0x130   : > { %v236_v46 = vsel %vm233_vm3, %v234_v58, %v235_v7 }
 0x131   : > { %v334_v50 = vpop.permute.xlu0 %333  ;;  %v407_v4 = vpop.permute.xlu1 %406 }
 0x132   : > { %v1129_v21 = vadd.f32 %v407_v4, %v401_v16 }
 0x134   : > { %v424_v32 = vrot.slane %v1129_v21, 2  ;;  %v434_v16 = vrot.slane %v1129_v21, 4 }
 0x135   : > { %v338_v51 = vpop.permute.xlu0 %337  ;;  %v446_v13 = vpop.permute.xlu1 %445 }
 0x136   : > { %v347_v0 = vadd.f32 %v338_v51, %v331_v62  ;;  %v345_v51 = vadd.f32 %v334_v50, %v329_v40  ;;  %v456_v53 = vadd.f32 %v446_v13, %v1129_v21  ;;  %v489_v13 = vrot.slane %v1050_v33, 3 }
 0x139   : > { %v350_v54 = vpop.permute.xlu0 %349  ;;  %v462_v31 = vpop.permute.xlu1 %461 }
 0x13a   : > { %v361_v52 = vadd.f32 %v350_v54, %v345_v51  ;;  %v472_v28 = vadd.f32 %v462_v31, %v456_v53 }
 0x13c   : > { %v368_v43 = vrot.slane %v361_v52, 1  ;;  %v480_v50 = vrot.slane %v472_v28, 3 }
 0x13d   : > { %v354_v60 = vpop.permute.xlu0 %353  ;;  %v497_v47 = vpop.permute.xlu1 %496 }
 0x13e   : > { %v1117_v3 = vadd.f32 %v354_v60, %v347_v0  ;;  %v370_v54 = vsel %vm289_vm4, %v368_v43, %v369_v11  ;;  %v562_v43 = vrot.slane %v1057_v36, 1 }
 0x140   : > { %v371_v10 = vrot.slane %v1117_v3, 1  ;;  %v380_v6 = vrot.slane %v1117_v3, 5 }
 0x141   : > { %v389_v1 = vpop.permute.xlu0 %388  ;;  %v511_v60 = vpop.permute.xlu1 %510 }
 0x142   : > { %v372_v19 = vsel %vm289_vm4, %v369_v11, %v371_v10  ;;  %v383_v34 = vsel %vm378_vm5, %v380_v6, %v382_v27  ;;  %v400_v59 = vadd.f32 %v389_v1, %v361_v52  ;;  %v241_v1 = vadd.f32 %v236_v46, %v1008_v14 }
 0x143   : > { %v376_v25 = vadd.f32 %v372_v19, %v242_v20 }
 0x145   : > { %v393_v9 = vpop.permute.xlu0 %392  ;;  %v387_v39 = vadd.f32 %v383_v34, %v376_v25  ;;  %v515_v10 = vpop.permute.xlu1 %514  ;;  %v507_v34 = vadd.f32 %v497_v47, %v472_v28 }
 0x146   : > { %v402_v22 = vadd.f32 %v393_v9, %v1117_v3  ;;  %v379_v3 = vrot.slane %v1119_v5, 5  ;;  %v375_v5 = vadd.f32 %v370_v54, %v241_v1 }
 0x149   : > { %v405_v15 = vpop.permute.xlu0 %404  ;;  %v580_v31 = vpop.permute.xlu1 %579 }
 0x14a   : > { %v416_v61 = vadd.f32 %v405_v15, %v400_v59  ;;  %v381_v15 = vsel %vm378_vm5, %v379_v3, %v380_v6  ;;  %v291_v3 = vrot.slane %v1113_v57, 1 }
 0x14b   : > { %v386_v25 = vadd.f32 %v381_v15, %v375_v5 }
 0x14c   : > { %v423_v4 = vrot.slane %v416_v61, 2 }
 0x14d   : > { %v409_v26 = vpop.permute.xlu0 %408  ;;  %v590_v51 = vpop.permute.xlu1 %589 }
 0x14e   : > { %v418_v29 = vadd.f32 %v409_v26, %v402_v22  ;;  %v425_v11 = vsel %vm243_vm6, %v423_v4, %v424_v32 }
 0x14f   : > { %v430_v6 = vadd.f32 %v425_v11, %v386_v25 }
 0x150   : > { %v426_v35 = vrot.slane %v418_v29, 2  ;;  %v435_v38 = vrot.slane %v418_v29, 4 }
 0x151   : > { %v444_v41 = vpop.permute.xlu0 %443  ;;  %v594_v15 = vpop.permute.xlu1 %593 }
 0x152   : > { %v427_v24 = vsel %vm243_vm6, %v424_v32, %v426_v35  ;;  %v438_v45 = vsel %vm433_vm7, %v435_v38, %v437_v37  ;;  %v455_v0 = vadd.f32 %v444_v41, %v416_v61  ;;  %v244_v32 = vrot.slane %v1012_v17, 2 }
 0x153   : > { %v431_v44 = vadd.f32 %v427_v24, %v387_v39  ;;  %v245_v41 = vrot.slane %v1014_v18, 2 }
 0x154   : > { %v1163_v47 = vadd.f32 %v244_v32, %v1008_v14 }
 0x155   : > { %v448_v48 = vpop.permute.xlu0 %447  ;;  %v442_v49 = vadd.f32 %v438_v45, %v431_v44 }
 0x156   : > { %v457_v62 = vadd.f32 %v448_v48, %v418_v29  ;;  %v436_v29 = vsel %vm433_vm7, %v434_v16, %v435_v38 }
 0x157   : > { %v441_v37 = vadd.f32 %v436_v29, %v430_v6 }
 0x159   : > { %v460_v55 = vpop.permute.xlu0 %459 }
 0x15a   : > { %v471_v8 = vadd.f32 %v460_v55, %v455_v0 }
 0x15c   : > { %v479_v20 = vrot.slane %v471_v8, 3 }
 0x15d   : > { %v464_v63 = vpop.permute.xlu0 %463 }
 0x15e   : > { %v473_v2 = vadd.f32 %v464_v63, %v457_v62  ;;  %v481_v35 = vsel %vm478_vm8, %v479_v20, %v480_v50 }
 0x15f   : > { %v486_v44 = vadd.f32 %v481_v35, %v441_v37 }
 0x160   : > { %v482_v9 = vrot.slane %v473_v2, 3 }
 0x161   : > { %v495_v12 = vpop.permute.xlu0 %494 }
 0x162   : > { %v483_v7 = vsel %vm478_vm8, %v480_v50, %v482_v9  ;;  %v490_v22 = vsel %vm478_vm8, %v482_v9, %v489_v13  ;;  %v506_v23 = vadd.f32 %v495_v12, %v471_v8  ;;  %v290_v13 = vrot.slane %v1135_v30, 1 }
 0x163   : > { %v487_v19 = vadd.f32 %v483_v7, %v442_v49  ;;  %v246_v49 = vsel %vm243_vm6, %v244_v32, %v245_v41  ;;  %v492_v52 = vadd.f32 %v486_v44, %v483_v7  ;;  %v252_v32 = vadd.f32 %v245_v41, %v1014_v18 }
 0x164   : > { %v522_v21 = vadd.f32 %v511_v60, %v506_v23  ;;  %v293_v23 = vrot.slane %v1111_v56, 1  ;;  %v292_v6 = vsel %vm289_vm4, %v290_v13, %v291_v3  ;;  %v251_v44 = vadd.f32 %v246_v49, %v1012_v17 }
 0x165   : > { %v493_v26 = vadd.f32 %v490_v22, %v487_v19  ;;  %v499_v27 = vpop.permute.xlu0 %498  ;;  %v571_v22 = vrot.slane %v1057_v36, 2 }
 0x166   : > { %v508_v33 = vadd.f32 %v499_v27, %v473_v2  ;;  %v529_v40 = vrot.slane %v522_v21, 4  ;;  %v538_v53 = vrot.slane %v522_v21, 5  ;;  %v547_v61 = vrot.slane %v522_v21, 6 }
 0x167   : > { %v294_v37 = vsel %vm289_vm4, %v291_v3, %v293_v23 }
 0x168   : > { %v1157_v39 = vadd.f32 %v515_v10, %v508_v33 }
 0x169   : > { %v513_v42 = vpop.permute.xlu0 %512 }
 0x16a   : > { %v523_v24 = vadd.f32 %v513_v42, %v507_v34  ;;  %v532_v38 = vrot.slane %v1157_v39, 4  ;;  %v541_v28 = vrot.slane %v1157_v39, 5  ;;  %v550_v2 = vrot.slane %v1157_v39, 6 }
 0x16b   : > { %v560_v8 = vrot.slane %v1157_v39, 1  ;;  %v569_v57 = vrot.slane %v1157_v39, 2 }
 0x16c   : > { %v530_v45 = vrot.slane %v523_v24, 4  ;;  %v539_v48 = vrot.slane %v523_v24, 5  ;;  %v548_v60 = vrot.slane %v523_v24, 6  ;;  %v559_v12 = vrot.slane %v523_v24, 1 }
 0x16d   : > { %v578_v55 = vpop.permute.xlu0 %577  ;;  %v568_v11 = vrot.slane %v523_v24, 2  ;;  %v587_v20 = vadd.f32 %v580_v31, %v523_v24  ;;  %v563_v29 = vsel %vm289_vm4, %v560_v8, %v562_v43  ;;  %v572_v31 = vsel %vm243_vm6, %v569_v57, %v571_v22 }
 0x16e   : > { %v531_v58 = vsel %vm433_vm7, %v529_v40, %v530_v45  ;;  %v533_v59 = vsel %vm433_vm7, %v530_v45, %v532_v38  ;;  %v586_v63 = vadd.f32 %v578_v55, %v522_v21  ;;  %v540_v46 = vsel %vm378_vm5, %v538_v53, %v539_v48 }
 0x16f   : > { %v536_v14 = vadd.f32 %v531_v58, %v492_v52  ;;  %v537_v62 = vadd.f32 %v533_v59, %v493_v26  ;;  %v542_v0 = vsel %vm378_vm5, %v539_v48, %v541_v28  ;;  %v549_v1 = vsel %vm233_vm3, %v547_v61, %v548_v60 }
 0x170   : > { %v551_v10 = vsel %vm233_vm3, %v548_v60, %v550_v2  ;;  %v598_v5 = vadd.f32 %v590_v51, %v586_v63  ;;  %v561_v30 = vsel %vm289_vm4, %v559_v12, %v560_v8  ;;  %v570_v21 = vsel %vm243_vm6, %v568_v11, %v569_v57 }
 0x171   : > { %v582_v50 = vpop.permute.xlu0 %581  ;;  %v545_v54 = vadd.f32 %v540_v46, %v536_v14  ;;  %v546_v4 = vadd.f32 %v542_v0, %v537_v62  ;;  %v620_v40 = vstv %s1180_s16  ;;  %v298_v48 = vadd.f32 %v292_v6, %v1163_v47 }
 0x172   : > { %v588_v9 = vadd.f32 %v582_v50, %v1157_v39  ;;  %v605_v36 = vrot.slane %v598_v5, 7  ;;  %v300_v51 = vadd.f32 %v293_v23, %v252_v32  ;;  %v615_v55 = vstv %s1184_s17 }
 0x173   : > { %v554_v7 = vadd.f32 %v549_v1, %v545_v54  ;;  %v555_v16 = vadd.f32 %v551_v10, %v546_v4  ;;  %v299_v58 = vadd.f32 %v294_v37, %v251_v44  ;;  %v616_v41 = vmul.f32 %v615_v55, %v298_v48 }
 0x174   : > { %v600_v19 = vadd.f32 %v594_v15, %v588_v9  ;;  %v618_v28 = vmul.f32 %v615_v55, %v300_v51 }
 0x175   : > { %v556_v25 = vadd.f32 %v554_v7, %v523_v24  ;;  %v557_v26 = vadd.f32 %v555_v16, %v1157_v39  ;;  %v592_v27 = vpop.permute.xlu0 %591  ;;  %v617_v61 = vmul.f32 %v615_v55, %v299_v58 }
 0x176   : > { %v599_v33 = vadd.f32 %v592_v27, %v587_v20  ;;  %v608_v56 = vrot.slane %v600_v19, 7 }
 0x177   : > { %v566_v34 = vadd.f32 %v561_v30, %v556_v25  ;;  %v567_v35 = vadd.f32 %v563_v29, %v557_v26 }
 0x178   : > { %v606_v39 = vrot.slane %v599_v33, 7 }
 0x179   : > { %v575_v42 = vadd.f32 %v570_v21, %v566_v34  ;;  %v576_v24 = vadd.f32 %v572_v31, %v567_v35 }
 0x17a   : > { %v607_v45 = vsel %vm604_vm9, %v605_v36, %v606_v39  ;;  %v609_v38 = vsel %vm604_vm9, %v606_v39, %v608_v56 }
 0x17b   : > { %v612_v52 = vadd.f32 %v607_v45, %v575_v42  ;;  %v613_v53 = vadd.f32 %v609_v38, %v576_v24 }
 0x17d   : > { %v621_v59 = vmul.f32 %v620_v40, %v612_v52  ;;  %v622_v18 = vmul.f32 %v620_v40, %v613_v53 }
 0x17f   : > { %v625_v60 = vrot.slane %v621_v59, 2  ;;  %v626_v43 = vrot.slane %v622_v18, 2 }
 0x181   : > { %v627_v17 = vsel %vm243_vm6, %v625_v60, %v626_v43  ;;  %v631_v49 = vsub.f32 %v616_v41, %v625_v60  ;;  %v633_v14 = vsub.f32 %v618_v28, %v626_v43 }
 0x182   : > { %v632_v62 = vsub.f32 %v617_v61, %v627_v17 }
 0x183   : > { %v634_v63 = vand.u32 2147483647, %v631_v49  ;;  %v636_v46 = vand.u32 2147483647, %v633_v14 }
 0x184   : > { %v635_v47 = vand.u32 2147483647, %v632_v62 }
 0x185   : > { %v637_v0 = vmul.f32 0.3275911, %v634_v63  ;;  %v639_v2 = vmul.f32 0.3275911, %v636_v46  ;;  %v682_v8 = vmul.f32 %v634_v63, %v634_v63  ;;  %v684_v13 = vmul.f32 %v636_v46, %v636_v46 }
 0x186   : > { %v638_v3 = vmul.f32 0.3275911, %v635_v47  ;;  %v683_v1 = vmul.f32 %v635_v47, %v635_v47 }
 0x187   : > { %v640_v50 = vadd.f32 1.0, %v637_v0  ;;  %v642_v54 = vadd.f32 1.0, %v639_v2  ;;  %v685_v5 = vsub.f32 0.0, %v682_v8  ;;  %v687_v23 = vsub.f32 0.0, %v684_v13 }
 0x188   : > { %v641_v4 = vadd.f32 1.0, %v638_v3  ;;  %v686_v11 = vsub.f32 0.0, %v683_v1 }
 0x189   : > { %865 = vrcp.f32 %v640_v50  ;;  %v688_v27 = vmul.f32 1.442695, %v685_v5  ;;  %v692_v6 = vmul.f32 1.442695, %v687_v23 }
 0x18a   : > { %867 = vrcp.f32 %v641_v4  ;;  %v690_v29 = vmul.f32 1.442695, %v686_v11 }
 0x18b   : > { %869 = vrcp.f32 %v642_v54 }
 0x18c   : > { %871 = vpow2.f32 %v688_v27 }
 0x18d   : > { %873 = vpow2.f32 %v690_v29 }
 0x18e   : > { %875 = vpow2.f32 %v692_v6 }
 0x196   : > { %v866_v9 = vpop.eup %865 }
 0x197   : > { %v868_v10 = vpop.eup %867  ;;  %v646_v12 = vmul.f32 %v866_v9, %v640_v50 }
 0x198   : > { %v870_v15 = vpop.eup %869  ;;  %v647_v7 = vmul.f32 %v868_v10, %v641_v4 }
 0x199   : > { %v648_v16 = vmul.f32 %v870_v15, %v642_v54  ;;  %v649_v57 = vsub.f32 2.0, %v646_v12  ;;  %v872_v41 = vpop.eup %871 }
 0x19a   : > { %v650_v19 = vsub.f32 2.0, %v647_v7  ;;  %v874_v60 = vpop.eup %873 }
 0x19b   : > { %v651_v20 = vsub.f32 2.0, %v648_v16  ;;  %v652_v22 = vmul.f32 %v866_v9, %v649_v57  ;;  %v876_v17 = vpop.eup %875 }
 0x19c   : > { %v653_v25 = vmul.f32 %v868_v10, %v650_v19 }
 0x19d   : > { %v654_v26 = vmul.f32 %v870_v15, %v651_v20  ;;  %v655_v30 = vmul.f32 1.0614054, %v652_v22 }
 0x19e   : > { %v656_v33 = vmul.f32 1.0614054, %v653_v25 }
 0x19f   : > { %v657_v34 = vmul.f32 1.0614054, %v654_v26  ;;  %v658_v35 = vadd.f32 -1.4531521, %v655_v30 }
 0x1a0   : > { %v659_v31 = vadd.f32 -1.4531521, %v656_v33 }
 0x1a1   : > { %v660_v36 = vadd.f32 -1.4531521, %v657_v34  ;;  %v661_v56 = vmul.f32 %v658_v35, %v652_v22 }
 0x1a2   : > { %v662_v21 = vmul.f32 %v659_v31, %v653_v25 }
 0x1a3   : > { %v663_v39 = vmul.f32 %v660_v36, %v654_v26  ;;  %v664_v32 = vadd.f32 1.4214138, %v661_v56 }
 0x1a4   : > { %v665_v37 = vadd.f32 1.4214138, %v662_v21 }
 0x1a5   : > { %v666_v42 = vadd.f32 1.4214138, %v663_v39  ;;  %v667_v24 = vmul.f32 %v664_v32, %v652_v22 }
 0x1a6   : > { %v668_v44 = vmul.f32 %v665_v37, %v653_v25 }
 0x1a7   : > { %v669_v40 = vmul.f32 %v666_v42, %v654_v26  ;;  %v670_v45 = vadd.f32 -0.28449672, %v667_v24 }
 0x1a8   : > { %v671_v38 = vadd.f32 -0.28449672, %v668_v44 }
 0x1a9   : > { %v672_v48 = vadd.f32 -0.28449672, %v669_v40  ;;  %v673_v51 = vmul.f32 %v670_v45, %v652_v22 }
 0x1aa   : > { %v674_v52 = vmul.f32 %v671_v38, %v653_v25 }
 0x1ab   : > { %v675_v53 = vmul.f32 %v672_v48, %v654_v26  ;;  %v676_v55 = vadd.f32 0.2548296, %v673_v51 }
 0x1ac   : > { %v677_v58 = vadd.f32 0.2548296, %v674_v52 }
 0x1ad   : > { %v678_v59 = vadd.f32 0.2548296, %v675_v53  ;;  %v679_v18 = vmul.f32 %v676_v55, %v652_v22 }
 0x1ae   : > { %v680_v28 = vmul.f32 %v677_v58, %v653_v25 }
 0x1af   : > { %v681_v43 = vmul.f32 %v678_v59, %v654_v26  ;;  %v694_v61 = vmul.f32 %v872_v41, %v679_v18 }
 0x1b0   : > { %v695_v49 = vmul.f32 %v874_v60, %v680_v28 }
 0x1b1   : > { %v696_v14 = vmul.f32 %v876_v17, %v681_v43  ;;  %v697_v62 = vsub.f32 1.0, %v694_v61 }
 0x1b2   : > { %v698_v63 = vsub.f32 1.0, %v695_v49 }
 0x1b3   : > { %v699_v46 = vsub.f32 1.0, %v696_v14  ;;  %v700_v47 = vmul.f32 %v697_v62, %v697_v62 }
 0x1b4   : > { %v701_v0 = vmul.f32 %v698_v63, %v698_v63 }
 0x1b5   : > { %v702_v2 = vmul.f32 %v699_v46, %v699_v46  ;;  %v703_v3 = vmul.f32 0.5, %v700_v47 }
 0x1b6   : > { %v704_v50 = vmul.f32 0.5, %v701_v0 }
 0x1b7   : > { %v705_v54 = vmul.f32 0.5, %v702_v2  ;;  %v709_v4 = vrot.slane %v703_v3, 6 }
 0x1b8   : > { %v710_v8 = vrot.slane %v704_v50, 6 }
 0x1b9   : > { %v712_v9 = vrot.slane %v705_v54, 6 }
 0x1ba   : > { %v711_v1 = vsel %vm233_vm3, %v709_v4, %v710_v8 }
 0x1bb   : > { %v713_v10 = vsel %vm233_vm3, %v710_v8, %v712_v9  ;;  %714 = vrot.lane.b32.xlu0 %v711_v1, %s919_s15 }
 0x1bc   : > { %716 = vrot.lane.b32.xlu1 %v713_v10, %s919_s15 }
 0x22d   : > { %v715_v12 = vpop.permute.xlu0 %714 }
 0x22e   : > { %v717_v13 = vpop.permute.xlu1 %716  ;;  %v721_v15 = vsel %vm720_vm10, %v715_v12, 0.0 }
 0x22f   : > { %v722_v7 = vsel %vm720_vm10, %v717_v13, 0.0 }
 0x230   : > { %v723_v16 = vadd.f32 %v722_v7, %v721_v15 }
 0x232   : > { %724 = vadd.xlane.f32.xlu0 %v723_v16 }
 0x2bb   : > { %v725_v57 = vpop.xlane.xlu0 %724 }
 0x2bc   : > { %v726_v5 = vrot.slane %v725_v57, 4 }
 0x2be   : > { %v727_v19 = vadd.f32 %v726_v5, %v725_v57 }
 0x2c0   : > { %v728_v11 = vrot.slane %v727_v19, 2 }
 0x2c2   : > { %v729_v20 = vadd.f32 %v728_v11, %v727_v19 }
 0x2c4   : > { %v730_v22 = vrot.slane %v729_v20, 1 }
 0x2c6   : > { %v731_v23 = vadd.f32 %v730_v22, %v729_v20 }
 0x2c8   : > { %829 = vpush %v731_v23 }
 0x2f9   : > { %s830_s22 = spop %829 }
 0x2fa   : > { %v733_v25 = vstv %s830_s22 }
 0x2fb   : > { %734 = vst [vmem:[%s202_s21] sm:$0xff] %v733_v25 }
 0x2fc PF: > { %s14_s12 = sadd.s32 1, %s902_s12  }
 0x2fd   : > { %p11_p1 = scmp.ge.s32.totalorder %s14_s12, 4  }
 0x2ff   :  { %13 = sbr.rel (!%p11_p1) target bundleno = 1 (0x1), region = 70 }
 0x304   :  { %754 = vsyncpa [#allocation4], 1 }
 0x305   :  { %756 = vsyncpa [#allocation4 + $0x1], 1 }

</bundles_post_ra>
